<compile_context>
chip_gen: v5e
topology: v5e:2x2
jax: 0.10.0
libtpu: 0.0.40
codegen_flags: <defaults>
</compile_context>

<pallas_src>
import jax
import jax.numpy as jnp
from jax.experimental import pallas as pl
from jax.experimental.pallas import tpu as pltpu

EPS = 1e-5


def _round_up(x, m):
    return (x + m - 1) // m * m


def _vmem_limit_bytes():
    """Explicit per-generation VMEM limit (don't rely on the scoped default)."""
    cap = None
    try:
        cap = getattr(pltpu.get_tpu_info(), "vmem_capacity_bytes", None)
    except Exception:
        cap = None
    if not cap:
        cap = 64 << 20          # conservative fallback (v7x physical VMEM)
    return int(min(cap * 3 // 4, 112 << 20))


def _auto_tile_m(M, K, C_pad, vmem_limit):
    """Largest M tile whose double-buffered working set fits ~half the limit."""
    budget = vmem_limit // 2
    per_row = 4 * (K + C_pad)          # 2 buffers x bf16 (patch row + output row)
    fixed = 4 * K * C_pad              # resident weights (2 buffers, bf16)
    t = (budget - fixed) // max(per_row, 1)
    t = max(256, min(int(t), 4096))
    t = min(t, _round_up(M, 256))      # don't over-pad tiny problems
    return max(256, (t // 256) * 256)


# ----------------------------- kernels -------------------------------------


def _conv_stats_kernel(p_ref, w_ref, sum_ref, sumsq_ref):
    # p_ref: (tile_m, K) bf16, w_ref: (K, C_pad) bf16, accumulators: (8, C_pad) f32.
    acc = jnp.dot(p_ref[...], w_ref[...], preferred_element_type=jnp.float32)

    @pl.when(pl.program_id(1) == 0)
    def _():
        sum_ref[...] = jnp.zeros_like(sum_ref)
        sumsq_ref[...] = jnp.zeros_like(sumsq_ref)

    ps = acc.reshape(-1, 8, acc.shape[-1])          # keep 8 sublane partials
    sum_ref[...] += jnp.sum(ps, axis=0)
    sumsq_ref[...] += jnp.sum(ps * ps, axis=0)


def _conv_stats_writeback_kernel(p_ref, w_ref, conv_ref, sum_ref, sumsq_ref):
    # Same as above, but also streams the bf16 conv activations back to HBM
    # (used when K > 2*C_pad so recomputing the matmul in pass 2 would cost
    # more HBM bytes than write+read of the activations).
    acc = jnp.dot(p_ref[...], w_ref[...], preferred_element_type=jnp.float32)
    conv_ref[...] = acc.astype(conv_ref.dtype)

    @pl.when(pl.program_id(1) == 0)
    def _():
        sum_ref[...] = jnp.zeros_like(sum_ref)
        sumsq_ref[...] = jnp.zeros_like(sumsq_ref)

    ps = acc.reshape(-1, 8, acc.shape[-1])
    sum_ref[...] += jnp.sum(ps, axis=0)
    sumsq_ref[...] += jnp.sum(ps * ps, axis=0)


def _recompute_bn_relu_kernel(p_ref, w_ref, ss_ref, o_ref):
    acc = jnp.dot(p_ref[...], w_ref[...], preferred_element_type=jnp.float32)
    ss = ss_ref[...]
    o_ref[...] = jnp.maximum(acc * ss[0:1, :] + ss[1:2, :], 0.0).astype(o_ref.dtype)


def _bn_relu_kernel(conv_ref, ss_ref, o_ref):
    acc = conv_ref[...].astype(jnp.float32)
    ss = ss_ref[...]
    o_ref[...] = jnp.maximum(acc * ss[0:1, :] + ss[1:2, :], 0.0).astype(o_ref.dtype)


# ----------------------------- wrapper --------------------------------------


def downsampling_conv_bn_relu(x, weight, bias, gamma, beta, *, tile_m=None):
    """x: (N, C_in, H, W) f32; weight: (C_out, C_in, 3, 3); bias/gamma/beta: (C_out,)."""
    del bias  # per-channel conv bias is exactly cancelled by BN's mean subtraction
    N, C_in, H, W = x.shape
    C_out = weight.shape[0]
    H_out = (H + 2 - 3) // 2 + 1
    W_out = (W + 2 - 3) // 2 + 1
    M = N * H_out * W_out
    K = C_in * 9
    C_pad = _round_up(C_out, 128)

    vmem_limit = _vmem_limit_bytes()
    if tile_m is None:
        tile_m = _auto_tile_m(M, K, C_pad, vmem_limit)
    assert tile_m % 16 == 0, "tile_m must be a multiple of 16 (bf16 sublane packing)"

    n_tiles = pl.cdiv(M, tile_m)
    n_half = pl.cdiv(n_tiles, 2)       # 2-way core split of the stats pass (v7x megacore)
    n_total = 2 * n_half
    M_pad = n_total * tile_m

    # ---- glue: NHWC pad + im2col (layout only, no math). K is NOT padded:
    # the (tile_m, K) block uses the full-array-dim exception, so HBM patch
    # traffic stays 2*K bytes/row and Mosaic masks lanes in-register.
    x_nhwc = jnp.transpose(x, (0, 2, 3, 1))
    x_p = jnp.pad(x_nhwc, ((0, 0), (1, 1), (1, 1), (0, 0)))
    cols = [x_p[:, kh:kh + 2 * H_out:2, kw:kw + 2 * W_out:2, :]
            for kh in range(3) for kw in range(3)]
    patches = jnp.concatenate(cols, axis=-1).reshape(M, K)   # column order (kh, kw, c_in)
    P = jnp.zeros((M_pad, K), jnp.bfloat16).at[:M].set(patches.astype(jnp.bfloat16))

    # weight (O, I, kh, kw) -> (kh, kw, I, O) -> (K, C_out); only the lane
    # (C_out) dim is padded so MXU columns and stores stay lane-dense.
    Wm = jnp.transpose(weight, (2, 3, 1, 0)).reshape(K, C_out)
    Wp = jnp.zeros((K, C_pad), jnp.bfloat16).at[:, :C_out].set(Wm.astype(jnp.bfloat16))

    flops_mm = 2 * M_pad * K * C_pad
    p_bytes = M_pad * K * 2
    w_bytes = K * C_pad * 2
    conv_bytes = M_pad * C_pad * 2

    p_spec1 = pl.BlockSpec((tile_m, K), lambda c, i: (c * n_half + i, 0))
    w_spec1 = pl.BlockSpec((K, C_pad), lambda c, i: (0, 0))     # resident weight block
    stat_spec = pl.BlockSpec((8, C_pad), lambda c, i: (c, 0))   # per-core accumulator row
    stats_shape = jax.ShapeDtypeStruct((16, C_pad), jnp.float32)

    # Pass-2 strategy: recompute the matmul only when re-reading P (2*K B/row)
    # is cheaper than a bf16 write + read of the conv activations (4*C_pad B/row).
    writeback = 2 * K > 4 * C_pad

    # ---- pass 1: conv matmul + per-channel sum / sumsq (global over all M) ----
    if writeback:
        conv_bf16, sum_p, sumsq_p = pl.pallas_call(
            _conv_stats_writeback_kernel,
            out_shape=(jax.ShapeDtypeStruct((M_pad, C_pad), jnp.bfloat16),
                       stats_shape, stats_shape),
            grid=(2, n_half),
            in_specs=[p_spec1, w_spec1],
            out_specs=(pl.BlockSpec((tile_m, C_pad), lambda c, i: (c * n_half + i, 0)),
                       stat_spec, stat_spec),
            compiler_params=pltpu.CompilerParams(
                dimension_semantics=("parallel", "arbitrary"),
                vmem_limit_bytes=vmem_limit),
            cost_estimate=pl.CostEstimate(
                flops=flops_mm + 3 * M_pad * C_pad, transcendentals=0,
                bytes_accessed=p_bytes + w_bytes + conv_bytes + 2 * 16 * C_pad * 4),
        )(P, Wp)
    else:
        conv_bf16 = None
        sum_p, sumsq_p = pl.pallas_call(
            _conv_stats_kernel,
            out_shape=(stats_shape, stats_shape),
            grid=(2, n_half),
            in_specs=[p_spec1, w_spec1],
            out_specs=(stat_spec, stat_spec),
            compiler_params=pltpu.CompilerParams(
                dimension_semantics=("parallel", "arbitrary"),
                vmem_limit_bytes=vmem_limit),
            cost_estimate=pl.CostEstimate(
                flops=flops_mm + 3 * M_pad * C_pad, transcendentals=0,
                bytes_accessed=p_bytes + w_bytes + 2 * 16 * C_pad * 4),
        )(P, Wp)

    # ---- fold BN (training-mode batch stats) into one per-channel FMA ----
    # Zero-padded M rows contribute 0 to sum/sumsq; dividing by the TRUE M keeps
    # the batch statistics exact.
    sum_c = jnp.sum(sum_p, axis=0)                      # merge core halves + sublane partials
    sumsq_c = jnp.sum(sumsq_p, axis=0)
    mean = sum_c / M
    var = jnp.maximum(sumsq_c / M - mean * mean, 0.0)   # biased variance (PyTorch BN fwd)
    gamma_p = jnp.zeros((C_pad,), jnp.float32).at[:C_out].set(gamma)
    beta_p = jnp.zeros((C_pad,), jnp.float32).at[:C_out].set(beta)
    scale = gamma_p * jax.lax.rsqrt(var + EPS)
    shift = beta_p - mean * scale
    ss = jnp.stack([scale, shift], axis=0)              # (2, C_pad): one pass-2 operand

    ss_spec = pl.BlockSpec((2, C_pad), lambda i: (0, 0))
    out_spec = pl.BlockSpec((tile_m, C_pad), lambda i: (i, 0))
    out_shape = jax.ShapeDtypeStruct((M_pad, C_pad), jnp.bfloat16)

    # ---- pass 2: scale/shift/ReLU, lane-dense bf16 stores ----
    if writeback:
        out_flat = pl.pallas_call(
            _bn_relu_kernel,
            out_shape=out_shape,
            grid=(n_total,),
            in_specs=[pl.BlockSpec((tile_m, C_pad), lambda i: (i, 0)), ss_spec],
            out_specs=out_spec,
            compiler_params=pltpu.CompilerParams(
                dimension_semantics=("parallel",), vmem_limit_bytes=vmem_limit),
            cost_estimate=pl.CostEstimate(
                flops=3 * M_pad * C_pad, transcendentals=0,
                bytes_accessed=2 * conv_bytes + 2 * C_pad * 4),
        )(conv_bf16, ss)
    else:
        out_flat = pl.pallas_call(
            _recompute_bn_relu_kernel,
            out_shape=out_shape,
            grid=(n_total,),
            in_specs=[pl.BlockSpec((tile_m, K), lambda i: (i, 0)),
                      pl.BlockSpec((K, C_pad), lambda i: (0, 0)),
                      ss_spec],
            out_specs=out_spec,
            compiler_params=pltpu.CompilerParams(
                dimension_semantics=("parallel",), vmem_limit_bytes=vmem_limit),
            cost_estimate=pl.CostEstimate(
                flops=flops_mm + 3 * M_pad * C_pad, transcendentals=0,
                bytes_accessed=p_bytes + w_bytes + conv_bytes + 2 * C_pad * 4),
        )(P, Wp, ss)

    # Slice valid rows/channels, back to NCHW, cast to the module's f32 output
    # dtype (transpose + convert fuse into one XLA copy over the bf16 slab).
    out = out_flat[:M, :C_out].reshape(N, H_out, W_out, C_out)
    return jnp.transpose(out, (0, 3, 1, 2)).astype(jnp.float32)


# ----------------------------- test harness ---------------------------------


def _reference(x, weight, bias, gamma, beta):
    y = jax.lax.conv_general_dilated(
        x, weight, window_strides=(2, 2), padding=((1, 1), (1, 1)),
        dimension_numbers=("NCHW", "OIHW", "NCHW"))
    y = y + bias[None, :, None, None]
    mean = y.mean(axis=(0, 2, 3), keepdims=True)
    var = ((y - mean) ** 2).mean(axis=(0, 2, 3), keepdims=True)
    y = (y - mean) / jnp.sqrt(var + EPS)
    y = y * gamma[None, :, None, None] + beta[None, :, None, None]
    return jnp.maximum(y, 0.0)


def _run_case(key, N, C_in, H, W, C_out, tile_m):
    kx, kw, kb, kg, kbt = jax.random.split(key, 5)
    x = jax.random.normal(kx, (N, C_in, H, W), dtype=jnp.float32)
    weight = jax.random.normal(kw, (C_out, C_in, 3, 3), dtype=jnp.float32) * 0.1
    bias = jax.random.normal(kb, (C_out,), dtype=jnp.float32) * 0.1
    gamma = 1.0 + 0.1 * jax.random.normal(kg, (C_out,), dtype=jnp.float32)
    beta = 0.1 * jax.random.normal(kbt, (C_out,), dtype=jnp.float32)

    out = downsampling_conv_bn_relu(x, weight, bias, gamma, beta, tile_m=tile_m)
    out = jax.block_until_ready(out)
    ref = _reference(x, weight, bias, gamma, beta)
    assert out.shape == ref.shape, (out.shape, ref.shape)
    assert jnp.allclose(out, ref, rtol=2e-2, atol=2e-2), "mismatch vs reference"
    return out


if __name__ == "__main__":
    key = jax.random.PRNGKey(0)
    k1, k2 = jax.random.split(key)

    # Stem case: K=36 <= 2*C_pad -> recompute path. tile_m=48 exercises several
    # M tiles, the 2-way stats core split, and the zero-padded-rows path.
    _run_case(k1, N=2, C_in=4, H=16, W=16, C_out=8, tile_m=48)

    # Deep-layer case: K=288 > 2*C_pad -> pass 1 writes bf16 conv activations
    # and pass 2 is a pure per-channel FMA+ReLU.
    _run_case(k2, N=2, C_in=32, H=8, W=8, C_out=8, tile_m=16)

    print("KERNEL_OK")
</pallas_src>

<mosaic_0001>
module attributes {stable_mosaic.version = 11 : i64} {
  func.func @_conv_stats_kernel(%arg0: i32, %arg1: i32, %arg2: memref<48x36xbf16, #tpu.memory_space<vmem>>, %arg3: memref<36x128xbf16, #tpu.memory_space<vmem>>, %arg4: memref<8x128xf32, #tpu.memory_space<vmem>>, %arg5: memref<8x128xf32, #tpu.memory_space<vmem>>) attributes {dimension_semantics = [#tpu.dimension_semantics<parallel>, #tpu.dimension_semantics<arbitrary>], iteration_bounds = array<i64: 2, 2>, scalar_prefetch = 0 : i64, scratch_operands = 0 : i64, tpu.core_type = #tpu.core_type<tc>, window_params = [{transform_indices = @transform_0, window_bounds = array<i64: 48, 36>}, {pipeline_mode = #tpu.pipeline_mode<synchronous>, transform_indices = @transform_1, window_bounds = array<i64: 36, 128>}, {transform_indices = @transform_2, window_bounds = array<i64: 8, 128>}, {transform_indices = @transform_3, window_bounds = array<i64: 8, 128>}]} {
    %c0 = arith.constant 0 : index
    %c0_0 = arith.constant 0 : index
    %0 = vector.load %arg2[%c0, %c0_0] : memref<48x36xbf16, #tpu.memory_space<vmem>>, vector<48x36xbf16>
    %c0_1 = arith.constant 0 : index
    %c0_2 = arith.constant 0 : index
    %1 = vector.load %arg3[%c0_1, %c0_2] : memref<36x128xbf16, #tpu.memory_space<vmem>>, vector<36x128xbf16>
    %cst = arith.constant dense<0.000000e+00> : vector<48x128xf32>
    %2 = tpu.matmul %0, %1, %cst {dimension_numbers = #tpu.dot_dimension_numbers<[1], [0], [0], [1], [0, 0, 1, 1], [], []>} : vector<48x36xbf16>, vector<36x128xbf16>, vector<48x128xf32> -> vector<48x128xf32>
    %c0_i32 = arith.constant 0 : i32
    %3 = arith.cmpi eq, %arg1, %c0_i32 : i32
    %4 = arith.extui %3 : i1 to i32
    %c0_i32_3 = arith.constant 0 : i32
    %5 = arith.cmpi ne, %4, %c0_i32_3 : i32
    scf.if %5 {
      %cst_14 = arith.constant 0.000000e+00 : f32
      %16 = vector.broadcast %cst_14 : f32 to vector<8x128xf32>
      %c0_15 = arith.constant 0 : index
      %c0_16 = arith.constant 0 : index
      %17 = vector.load %arg4[%c0_15, %c0_16] : memref<8x128xf32, #tpu.memory_space<vmem>>, vector<8x128xf32>
      tpu.vector_store %arg4[%c0_15, %c0_16], %16 {strides = array<i32>} : memref<8x128xf32, #tpu.memory_space<vmem>>, vector<8x128xf32>,
      %cst_17 = arith.constant 0.000000e+00 : f32
      %18 = vector.broadcast %cst_17 : f32 to vector<8x128xf32>
      %c0_18 = arith.constant 0 : index
      %c0_19 = arith.constant 0 : index
      %19 = vector.load %arg5[%c0_18, %c0_19] : memref<8x128xf32, #tpu.memory_space<vmem>>, vector<8x128xf32>
      tpu.vector_store %arg5[%c0_18, %c0_19], %18 {strides = array<i32>} : memref<8x128xf32, #tpu.memory_space<vmem>>, vector<8x128xf32>,
    } else {
    }
    %6 = vector.shape_cast %2 : vector<48x128xf32> to vector<6x8x128xf32>
    %c0_4 = arith.constant 0 : index
    %c0_5 = arith.constant 0 : index
    %7 = vector.load %arg4[%c0_4, %c0_5] : memref<8x128xf32, #tpu.memory_space<vmem>>, vector<8x128xf32>
    %cst_6 = arith.constant dense<0.000000e+00> : vector<8x128xf32>
    %8 = vector.multi_reduction <add>, %6, %cst_6 [0] : vector<6x8x128xf32> to vector<8x128xf32>
    %9 = arith.addf %7, %8 : vector<8x128xf32>
    %c0_7 = arith.constant 0 : index
    %c0_8 = arith.constant 0 : index
    %10 = vector.load %arg4[%c0_7, %c0_8] : memref<8x128xf32, #tpu.memory_space<vmem>>, vector<8x128xf32>
    tpu.vector_store %arg4[%c0_7, %c0_8], %9 {strides = array<i32>} : memref<8x128xf32, #tpu.memory_space<vmem>>, vector<8x128xf32>,
    %c0_9 = arith.constant 0 : index
    %c0_10 = arith.constant 0 : index
    %11 = vector.load %arg5[%c0_9, %c0_10] : memref<8x128xf32, #tpu.memory_space<vmem>>, vector<8x128xf32>
    %12 = arith.mulf %6, %6 : vector<6x8x128xf32>
    %cst_11 = arith.constant dense<0.000000e+00> : vector<8x128xf32>
    %13 = vector.multi_reduction <add>, %12, %cst_11 [0] : vector<6x8x128xf32> to vector<8x128xf32>
    %14 = arith.addf %11, %13 : vector<8x128xf32>
    %c0_12 = arith.constant 0 : index
    %c0_13 = arith.constant 0 : index
    %15 = vector.load %arg5[%c0_12, %c0_13] : memref<8x128xf32, #tpu.memory_space<vmem>>, vector<8x128xf32>
    tpu.vector_store %arg5[%c0_12, %c0_13], %14 {strides = array<i32>} : memref<8x128xf32, #tpu.memory_space<vmem>>, vector<8x128xf32>,
    return
  }
  func.func @transform_0(%arg0: i32, %arg1: i32) -> (i32, i32) {
    %c2_i32 = arith.constant 2 : i32
    %0 = arith.muli %arg0, %c2_i32 : i32
    %1 = arith.addi %0, %arg1 : i32
    %c0_i32 = arith.constant 0 : i32
    %c0_i32_0 = arith.constant 0 : i32
    return %1, %c0_i32 : i32, i32
  }
  func.func @transform_1(%arg0: i32, %arg1: i32) -> (i32, i32) {
    %c0_i32 = arith.constant 0 : i32
    %c0_i32_0 = arith.constant 0 : i32
    %c0_i32_1 = arith.constant 0 : i32
    return %c0_i32, %c0_i32_0 : i32, i32
  }
  func.func @transform_2(%arg0: i32, %arg1: i32) -> (i32, i32) {
    %c0_i32 = arith.constant 0 : i32
    %c0_i32_0 = arith.constant 0 : i32
    return %arg0, %c0_i32 : i32, i32
  }
  func.func @transform_3(%arg0: i32, %arg1: i32) -> (i32, i32) {
    %c0_i32 = arith.constant 0 : i32
    %c0_i32_0 = arith.constant 0 : i32
    return %arg0, %c0_i32 : i32, i32
  }
}

</mosaic_0001>

<bundles_post_ra>
// kernel: tpu_custom_call.1
= control target key start
LH: loop header
LB: loop body
LE: loop exit
PB: predicated region body
PF: predicated region fallthrough
CT: control target
= control target key end

     0   :  { %9 = vsyncpa [#allocation3], 0  ;;  %s900_s0 = inlined_call_operand.vmem [shape: bf16[192,36], index: 0, kind: input, shape index: {}]   ;;  %s901_s1 = inlined_call_operand.vmem [shape: bf16[36,128], index: 1, kind: input, shape index: {}]   ;;  %s902_s2 = inlined_call_operand.hbm [shape: f32[16,128], index: 2, kind: output, shape index: {0}]   ;;  %s903_s3 = inlined_call_operand.hbm [shape: f32[16,128], index: 3, kind: output, shape index: {1}]  }
   0x1   :  { %11 = vsyncpa [#allocation3 + $0x1], 0 }
   0x2   :  { %12 = vsyncpa [#allocation5], 0 }
   0x3   :  { %14 = vsyncpa [#allocation5 + $0x1], 0  ;;  %s732_s12 = smov 0   ;;  %s734_s13 = smov 0  }
   0x4   :  { %s736_s14 = smov 0   ;;  %s738_s15 = smov 0  }
   0x5   :  { %s740_s16 = smov 0   ;;  %s742_s17 = smov 0  }
   0x6   :  { %s744_s18 = smov 0   ;;  %s746_s19 = smov 0  }
   0x7 LB: > { %s454_s20 = sadd.s32 4294967295, %s709_s19   ;;  %s455_s21 = sadd.s32 4294967294, %s709_s19   ;;  %s709_s19 = sphi %s746_s19, %s20_s19   ;;  %s705_s18 = sphi %s744_s18, %s912_s18   ;;  %s701_s17 = sphi %s742_s17, %s911_s17   ;;  %s697_s16 = sphi %s740_s16, %s910_s16   ;;  %s693_s15 = sphi %s738_s15, %s909_s15   ;;  %s689_s14 = sphi %s736_s14, %s908_s14   ;;  %s685_s13 = sphi %s734_s13, %s907_s13   ;;  %s681_s12 = sphi %s732_s12, %s906_s12  }
   0x8   : > { %s29_s22 = sadd.s32 1, %s701_s17  ;;  %s32_s23 = sadd.s32 1, %s705_s18 }
   0x9   : > { %p30_p0 = scmp.ge.s32.totalorder %s29_s22, 2  ;;  %p100_p1 = scmp.ne.s32.totalorder %s689_s14, %s685_s13 }
   0xa   : > { %p101_p2 = scmp.eq.s32.totalorder %s454_s20, 3  ;;  %p106_p4 = scmp.ne.s32.totalorder %s685_s13, %s681_s12 }
   0xb   : > { %s914_s22 = smov (%p30_p0, %s29_s22), 0  ;;  %s916_s23 = smov (!%p30_p0, %s32_s23), %s705_s18 }
   0xc   : > { %p781_p3 = por %p101_p2, %p100_p1  ;;  %p34_p5 = scmp.ge.s32.totalorder %s916_s23, 2 }
   0xd   : > { %p107_p6 = scmp.eq.s32.totalorder %s455_s21, 3  ;;  %p460_p7 = scmp.ge.s32.totalorder %s709_s19, 1 }
   0xe   : > { %p167_p8 = scmp.lt.s32.totalorder %s709_s19, 5  ;;  %s918_s23 = smov (%p34_p5, %s916_s23), 0 }
   0xf   : > { %p791_p9 = por %p107_p6, %p106_p4  ;;  %s87_s26 = ssub.s32 %s705_s18, %s918_s23 }
  0x10   : > { %p168_p10 = pnand %p460_p7, %p167_p8  ;;  %s90_s27 = sadd.s32 1, %s689_s14 }
  0x11   : > { %p88_p11 = scmp.eq.s32.totalorder %s87_s26, 0  ;;  %s802_s29 = sand.u32 (!%p168_p10), 1, %s685_s13  }
  0x12   : > { %171 = sbr.rel (%p168_p10) target bundleno = 212 (0xd4), region = 28  ;;  %s461_s5 = sshll.u32 (!%p168_p10), %s802_s29, 3 }
  0x13   : > { %s799_s28 = scalar_select %p88_p11, %s689_s14, %s90_s27  }
  0x14   : > { %s463_s6 = sshll.u32 (!%p168_p10), %s697_s16, 1  ;;  %s821_s4 = scalar_lea.vmem (!%p168_p10), [#allocation2], %s461_s5 }
  0x15   : > { %s199_s7 = sadd.s32 (!%p168_p10), %s693_s15, %s463_s6  ;;  %s825_s6 = scalar_lea.vmem (!%p168_p10), [#allocation4], %s461_s5 }
  0x16   : > { %s200_s8 = smul.u32 (!%p168_p10), 6, %s199_s7  ;;  %p488_p13 = scmp.ne.s32.totalorder (!%p168_p10), %s693_s15, 0 }
  0x17   : > { %v219_v0 = vld [vmem:[%s901_s1 + $0x10] sm:$0x3]  ;;  %vm260_vm0 = vcmask 1041408   ;;  %v499_v4 = vld [vmem:[%s901_s1 + $0x8] sm:$0xff]  ;;  %v498_v5 = vld [vmem:[%s901_s1] sm:$0xff]  ;;  %vm250_vm1 = vcmask 293888  }
  0x18   : > { %v244_v1 = vunpack.c.l.b16 %v219_v0  ;;  %p201_p12 = scmp.lt.s32.totalorder %s200_s8, 23 }
  0x1a   : > { %v247_v2 = vpack.c.b16 %v244_v1, %v244_v1  ;;  %s920_s8 = smov (!%p201_p12, %s200_s8), 23 }
  0x1b   : > { %s464_s21 = sshll.u32 %s920_s8, 2 }
  0x1c   : > { %v262_v3 = vsel %vm260_vm0, %v247_v2, 0  ;;  %s204_s30 = scalar_lea.vmem %s900_s0, %s464_s21 }
  0x1d   : > { %269 = vmatpush.bf16.msra.mxu0 %v262_v3  ;;  %500 = vmatpush.bf16.msra.mxu1 %v262_v3  ;;  %v495_v6 = vld [vmem:[%s204_s30] sm:$0xff]  ;;  %v496_v7 = vld [vmem:[%s204_s30 + $0x8] sm:$0xff]  ;;  %v497_v8 = vld [vmem:[%s204_s30 + $0x10] sm:$0xff] }
  0x1e   : > { %501 = vmatpush.bf16.msra.mxu2 %v262_v3 }
  0x21   : > { %270 = vmatpush.bf16.msra.mxu0 %v499_v4  ;;  %502 = vmatpush.bf16.msra.mxu1 %v499_v4 }
  0x22   : > { %503 = vmatpush.bf16.msra.mxu2 %v499_v4 }
  0x25   : > { %271 = vmatpush.bf16.msra.mxu0 %v498_v5  ;;  %504 = vmatpush.bf16.msra.mxu1 %v498_v5 }
  0x26   : > { %505 = vmatpush.bf16.msra.mxu2 %v498_v5 }
  0x28   : > { %485 = vmatmul.msk.bf16.vlgmr.msra.gmra.mxu0 %vm250_vm1, %v495_v6  ;;  %486 = vmatmul.msk.bf16.vlgmr.msra.gmra.mxu1 %vm250_vm1, %v496_v7 }
  0x29   : > { %487 = vmatmul.msk.bf16.vlgmr.msra.gmra.mxu2 %vm250_vm1, %v497_v8 }
  0xa5   : > { %v273_v9 = vpop.f32.mrf.mxu0  ;;  %v278_v10 = vpop.f32.mrf.mxu1 }
  0xac   : > { %v283_v11 = vpop.f32.mrf.mxu2 }
  0xad   : > { %v275_v12 = vpop.f32.mrf.mxu0  ;;  %v280_v13 = vpop.f32.mrf.mxu1 }
  0xb0   : > { %291 = sbr.rel (%p488_p13) target bundleno = 184 (0xb8), region = 32 }
  0xb4   : > { %v285_v14 = vpop.f32.mrf.mxu2 }
  0xb5   : > { %v711_v15 = vmov 0.0  }
  0xb6   : > { %292 = vst [vmem:[%s821_s4] sm:$0xff] %v711_v15 }
  0xb7   : > { %293 = vst [vmem:[%s825_s6] sm:$0xff] %v711_v15 }
  0xb8 PF: > { %v295_v16 = vadd.f32 %v275_v12, %v273_v9  ;;  %v303_v17 = vmul.f32 %v273_v9, %v273_v9  ;;  %v304_v18 = vmul.f32 %v275_v12, %v275_v12  ;;  %v305_v19 = vmul.f32 %v278_v10, %v278_v10  ;;  %s491_s7 = sshll.u32 %s697_s16, 3  ;;  %s334_s11 = sshll.u32 %s821_s4, 4  ;;  %s335_s11 = int_to_ptr.vmem [resolvable:$true] %s334_s11 }
  0xb9   : > { %v306_v21 = vmul.f32 %v280_v13, %v280_v13  ;;  %v307_v24 = vmul.f32 %v283_v11, %v283_v11  ;;  %s332_s8 = scalar_lea.hbm %s902_s2, %s491_s7  ;;  %v308_v27 = vmul.f32 %v285_v14, %v285_v14  ;;  %s346_s16 = scalar_lea.hbm %s903_s3, %s491_s7 }
  0xba   : > { %v296_v20 = vadd.f32 %v295_v16, %v278_v10  ;;  %v309_v22 = vadd.f32 %v304_v18, %v303_v17  ;;  %s336_s20 = sshll.u32 %s332_s8, 4  ;;  %s348_s21 = sshll.u32 %s825_s6, 4  ;;  %s337_s20 = int_to_ptr.hbm [resolvable:$true] %s336_s20  ;;  %s842_s21 = int_to_ptr.vmem [resolvable:$true] %s348_s21 }
  0xbb   : > { %s350_s26 = sshll.u32 %s346_s16, 4  ;;  %s317_s27 = scalar_lea.sflag [#allocation3], %s802_s29  ;;  %s844_s26 = int_to_ptr.hbm [resolvable:$true] %s350_s26 }
  0xbc   : > { %v297_v23 = vadd.f32 %v296_v20, %v280_v13  ;;  %v310_v25 = vadd.f32 %v309_v22, %v305_v19  ;;  %s597_s30 = sshra.s32 %s337_s20, 4  ;;  %s603_s8 = scalar_lea.hbm %s902_s2, 16  ;;  %s598_s30 = int_to_ptr.hbm [resolvable:$true] %s597_s30 }
  0xbd   : > { %v294_v29 = vld [vmem:[%s821_s4] sm:$0xff]  ;;  %s599_s7 = scalar_lea.hbm %s598_s30, 8  ;;  %p604_p4 = scmp.lt.s32.totalorder %s598_s30, %s902_s2 }
  0xbe   : > { %v298_v26 = vadd.f32 %v297_v23, %v283_v11  ;;  %v311_v28 = vadd.f32 %v310_v25, %v306_v21  ;;  %v302_v32 = vld [vmem:[%s825_s6] sm:$0xff]  ;;  %p600_p0 = scmp.ne.s32.totalorder %s598_s30, %s599_s7  ;;  %p605_p5 = scmp.lt.s32.totalorder %s603_s8, %s599_s7 }
  0xc0   : > { %v299_v30 = vadd.f32 %v298_v26, %v285_v14  ;;  %v312_v31 = vadd.f32 %v311_v28, %v307_v24  ;;  %p601_p1 = pnand %p600_p0, %p781_p3  ;;  %p606_p6 = por %p605_p5, %p604_p4 }
  0xc2   : > { %v300_v33 = vadd.f32 %v299_v30, %v294_v29  ;;  %v313_v34 = vadd.f32 %v312_v31, %v308_v27  ;;  %p602_p2 = pneg %p601_p1 }
  0xc4   : > { %301 = vst [vmem:[%s821_s4] sm:$0xff] %v300_v33  ;;  %v314_v35 = vadd.f32 %v313_v34, %v302_v32  ;;  %p607_p7 = pnand %p606_p6, %p602_p2 }
  0xc6   : > { %610 = shalt.err (!%p607_p7)
}
  0xc7   : > { %506 = dma.vmem_to_hbm [thread:$0]  (%p781_p3), %s335_s11, 128, %s337_s20, %s317_s27   ;;  %315 = vst [vmem:[%s825_s6] sm:$0xff] %v314_v35 }
  0xc8   : > { %s322_s4 = scalar_lea.sflag [#allocation5], %s802_s29  ;;  %s625_s16 = sshra.s32 %s844_s26, 4  ;;  %s626_s16 = int_to_ptr.hbm [resolvable:$true] %s625_s16 }
  0xc9   : > { %s627_s15 = scalar_lea.hbm %s626_s16, 8  ;;  %s631_s5 = scalar_lea.hbm %s903_s3, 16 }
  0xca   : > { %p628_p8 = scmp.ne.s32.totalorder %s626_s16, %s627_s15  ;;  %p632_p12 = scmp.lt.s32.totalorder %s626_s16, %s903_s3 }
  0xcb   : > { %p633_p13 = scmp.lt.s32.totalorder %s631_s5, %s627_s15 }
  0xcc   : > { %p629_p10 = pnand %p628_p8, %p781_p3 }
  0xcd   : > { %p634_p0 = por %p633_p13, %p632_p12 }
  0xce   : > { %p630_p11 = pneg %p629_p10 }
  0xd0   : > { %p635_p1 = pnand %p634_p0, %p630_p11 }
  0xd2   : > { %638 = shalt.err (!%p635_p1)
}
  0xd3   : > { %507 = dma.vmem_to_hbm [thread:$0]  (%p781_p3), %s842_s21, 128, %s844_s26, %s322_s4  }
  0xd4 PF: > { %p517_p2 = scmp.ge.s32.totalorder %s709_s19, 2  ;;  %s362_s29 = sand.u32 1, %s681_s12  }
  0xd5   : > { %s363_s6 = scalar_lea.sflag [#allocation3], %s362_s29 }
  0xd6   : > { %p511_p4 = pnand %p517_p2, %p791_p9 }
  0xd8   : > { %p512_p5 = pneg %p511_p4 }
  0xda   : > { %672 = dma.done.wait (%p512_p5), %s363_s6, 128  }
  0xdb   : > { %674 = vsyncadd (%p512_p5), %s363_s6, 4294967168  ;;  %s373_s11 = scalar_lea.sflag [#allocation5], %s362_s29 }
  0xdc   : > { %676 = dma.done.wait (%p512_p5), %s373_s11, 128  }
  0xdd   : > { %678 = vsyncadd (%p512_p5), %s373_s11, 4294967168  ;;  %s20_s19 = sadd.s32 1, %s709_s19   ;;  %s906_s12 = smov %s685_s13 }
  0xde   : > { %p17_p6 = scmp.ge.s32.totalorder %s20_s19, 6   ;;  %s907_s13 = smov %s689_s14 }
  0xdf   : > { %s908_s14 = smov %s799_s28  ;;  %s909_s15 = smov %s701_s17 }
  0xe0   : > { %s910_s16 = smov %s705_s18  ;;  %s911_s17 = smov %s914_s22 }
  0xe1   : > { %s912_s18 = smov %s918_s23  ;;  %19 = sbr.rel (!%p17_p6) target bundleno = 7 (0x7), region = 84 }
  0xe6   :  { %379 = vsyncpa [#allocation3], 1 }
  0xe7   :  { %381 = vsyncpa [#allocation3 + $0x1], 1 }
  0xe8   :  { %382 = vsyncpa [#allocation5], 1 }
  0xe9   :  { %384 = vsyncpa [#allocation5 + $0x1], 1 }

</bundles_post_ra>
